<compile_context>
chip_gen: v5e
topology: v5e:2x2
jax: 0.10.0
libtpu: 0.0.40
codegen_flags: <defaults>
</compile_context>

<pallas_src>
import functools

import jax
import jax.numpy as jnp
from jax.experimental import pallas as pl
from jax.experimental.pallas import tpu as pltpu


def _focal_loss_kernel(logits_ref, tgt_ref, out_ref, *, alpha, gamma,
                       hw_total, need_mask):
    c, tb, lanes = logits_ref.shape                 # (C, TILE_ROWS, 128)

    x = logits_ref[...].astype(jnp.float32)         # (C, tb, 128)
    t = tgt_ref[...]                                 # (tb, 128) int32

    if need_mask:                                    # static python branch
        j = pl.program_id(1)
        row = jax.lax.broadcasted_iota(jnp.int32, (tb, lanes), 0)
        lane = jax.lax.broadcasted_iota(jnp.int32, (tb, lanes), 1)
        pix = (j * tb + row) * lanes + lane
        valid = pix < hw_total                       # (tb, 128)
        x = jnp.where(valid[None], x, 0.0)           # scrub padded pixels
        t = jnp.where(valid, t, 0)

    # Numerically stable softmax pieces over the channel axis (axis 0 ->
    # cross-vreg elementwise ops on fully packed 8x128 pixel vregs).
    m = jnp.max(x, axis=0)                           # (tb, 128)
    e = jnp.exp(x - m[None])                         # (C, tb, 128)  EUP
    sum_e = jnp.sum(e, axis=0)                       # (tb, 128)

    # One-hot gather of the target channel (from both x and e).
    ch = jax.lax.broadcasted_iota(jnp.int32, (c, tb, lanes), 0)
    onehot = ch == t[None]
    tgt_logit = jnp.sum(jnp.where(onehot, x, 0.0), axis=0)   # (tb, 128)
    e_tgt = jnp.sum(jnp.where(onehot, e, 0.0), axis=0)        # (tb, 128)

    ce = (m + jnp.log(sum_e)) - tgt_logit            # CE, reduction='none'
    # 1 - pt = (sum_e - e_tgt) / sum_e : reuses e, no exp(-ce) EUP push, and
    # is >= 0 by construction (no cancellation when pt -> 1).
    inv_sum = pl.reciprocal(sum_e, approx=False)
    omp = (sum_e - e_tgt) * inv_sum

    if gamma == 2.0:                                 # static python branch
        w_fac = omp * omp                            # avoid pow -> exp/log
    elif gamma == 1.0:
        w_fac = omp
    else:
        w_fac = jnp.maximum(omp, 0.0) ** gamma       # clamp guards fp noise
    focal = alpha * w_fac * ce                       # (tb, 128)

    if need_mask:
        focal = jnp.where(valid, focal, 0.0)

    # Per-lane partial sums only (no full cross-lane reduce, tiny output DMA).
    out_ref[...] = jnp.sum(focal, axis=0, keepdims=True)     # (1, 128)


def focal_loss(inputs, targets, *, alpha=0.25, gamma=2.0, ignore_index=None,
               max_block_bytes=6 * 1024 * 1024):
    """Focal loss matching the PyTorch module's forward (mean reduction).

    inputs:  (N, C, H, W) float logits (NCHW, like PyTorch conv outputs)
    targets: (N, H, W) integer class indices
    """
    # TODO(synk): ignore_index path (masked mean with dynamic denominator) not
    # implemented; the module's default is None.
    assert ignore_index is None

    n, c, h, w = inputs.shape
    hw = h * w
    hw_pad = ((hw + 127) // 128) * 128
    rows = hw_pad // 128

    x = inputs.reshape(n, c, hw)
    t = targets.reshape(n, hw).astype(jnp.int32)
    if hw_pad != hw:
        # Rare path: pad the pixel axis up to a lane multiple (masked in-kernel).
        x = jnp.pad(x, ((0, 0), (0, 0), (0, hw_pad - hw)))
        t = jnp.pad(t, ((0, 0), (0, hw_pad - hw)))

    # Free reshapes: pixels packed onto sublanes (rows) and lanes (128).
    x4 = x.reshape(n, c, rows, 128)
    t3 = t.reshape(n, rows, 128)

    # Tile the row axis.  Budget counts logits AND int32 targets bytes per
    # pixel-row; tile rows are a multiple of 8 (or the full extent).
    itemsize = jnp.dtype(x4.dtype).itemsize
    bytes_per_row = c * 128 * itemsize + 128 * 4
    cap_rows = max(8, ((max_block_bytes // bytes_per_row) // 8) * 8)
    tile_rows = min(rows, cap_rows)
    if tile_rows != rows:
        tile_rows = max(8, (tile_rows // 8) * 8)

    # Megacore / pipelining: make sure small-batch inputs still produce a few
    # grid steps per TensorCore (v7x shards the "parallel" grid across 2 TCs).
    min_steps = 8
    if rows > 8 and n * pl.cdiv(rows, tile_rows) < min_steps:
        want_blocks = pl.cdiv(min_steps, n)
        tr = max(8, ((pl.cdiv(rows, want_blocks) + 7) // 8) * 8)
        tile_rows = min(tile_rows, tr)

    num_blocks = pl.cdiv(rows, tile_rows)
    need_mask = (hw_pad != hw) or (rows % tile_rows != 0)

    # VMEM budget: double-buffered logits + targets tiles plus slack, sized to
    # stay inside v7x's 64 MiB physical VMEM while overriding the small
    # scoped defaults on v5e/v6e.
    logits_tile_bytes = c * tile_rows * 128 * itemsize
    tgt_tile_bytes = tile_rows * 128 * 4
    vmem_limit = int(min(max(2 * (logits_tile_bytes + tgt_tile_bytes) + (4 << 20),
                             32 << 20),
                         48 << 20))

    kernel = functools.partial(
        _focal_loss_kernel,
        alpha=float(alpha),
        gamma=float(gamma),
        hw_total=hw,
        need_mask=need_mask,
    )

    partials = pl.pallas_call(
        kernel,
        out_shape=jax.ShapeDtypeStruct((n, num_blocks, 1, 128), jnp.float32),
        grid_spec=pltpu.PrefetchScalarGridSpec(
            num_scalar_prefetch=0,
            grid=(n, num_blocks),
            in_specs=[
                # (C, tile_rows, 128) logits block, leading image dim squeezed.
                pl.BlockSpec((None, c, tile_rows, 128),
                             lambda i, j: (i, 0, j, 0)),
                # (tile_rows, 128) int32 targets block, fully lane/sublane dense.
                pl.BlockSpec((None, tile_rows, 128),
                             lambda i, j: (i, j, 0)),
            ],
            # Per-block per-lane partial sums -> no resident accumulator,
            # grid fully parallel, tiny lane-dense output DMA.
            out_specs=pl.BlockSpec((None, None, 1, 128),
                                   lambda i, j: (i, j, 0, 0)),
        ),
        compiler_params=pltpu.CompilerParams(
            dimension_semantics=("parallel", "parallel"),
            vmem_limit_bytes=vmem_limit,
        ),
    )(x4, t3)

    # Final mean over all valid pixels (padded pixels contributed exactly 0).
    return jnp.sum(partials) / jnp.float32(n * hw)


def _reference_focal_loss(inputs, targets, alpha=0.25, gamma=2.0):
    n, c, h, w = inputs.shape
    x = jnp.transpose(inputs, (0, 2, 3, 1)).reshape(-1, c).astype(jnp.float32)
    t = targets.reshape(-1).astype(jnp.int32)
    lse = jax.nn.logsumexp(x, axis=-1)
    ce = lse - jnp.take_along_axis(x, t[:, None], axis=-1)[:, 0]
    pt = jnp.exp(-ce)
    return jnp.mean(alpha * (1.0 - pt) ** gamma * ce)


if __name__ == "__main__":
    key = jax.random.PRNGKey(0)
    k1, k2 = jax.random.split(key)

    N, C, H, W = 2, 4, 16, 16
    logits = jax.random.normal(k1, (N, C, H, W), dtype=jnp.float32)
    targets = jax.random.randint(k2, (N, H, W), 0, C, dtype=jnp.int32)

    loss = focal_loss(logits, targets, alpha=0.25, gamma=2.0)
    loss = jax.block_until_ready(loss)

    ref = _reference_focal_loss(logits, targets)
    assert jnp.allclose(loss, ref, atol=1e-5, rtol=1e-5), (loss, ref)

    print("KERNEL_OK")
</pallas_src>

<mosaic_0001>
module attributes {stable_mosaic.version = 11 : i64} {
  func.func @_focal_loss_kernel(%arg0: i32, %arg1: i32, %arg2: memref<1x4x2x128xf32, #tpu.memory_space<vmem>>, %arg3: memref<1x2x128xi32, #tpu.memory_space<vmem>>, %arg4: memref<1x1x1x128xf32, #tpu.memory_space<vmem>>) attributes {dimension_semantics = [#tpu.dimension_semantics<parallel>, #tpu.dimension_semantics<parallel>], iteration_bounds = array<i64: 2, 1>, scalar_prefetch = 0 : i64, scratch_operands = 0 : i64, tpu.core_type = #tpu.core_type<tc>, window_params = [{transform_indices = @transform_0, window_bounds = array<i64: 1, 4, 2, 128>}, {transform_indices = @transform_1, window_bounds = array<i64: 1, 2, 128>}, {transform_indices = @transform_2, window_bounds = array<i64: 1, 1, 1, 128>}]} {
    %c0 = arith.constant 0 : index
    %c0_0 = arith.constant 0 : index
    %c0_1 = arith.constant 0 : index
    %c0_2 = arith.constant 0 : index
    %0 = vector.load %arg2[%c0, %c0_0, %c0_1, %c0_2] : memref<1x4x2x128xf32, #tpu.memory_space<vmem>>, vector<1x4x2x128xf32>
    %1 = vector.shape_cast %0 : vector<1x4x2x128xf32> to vector<4x2x128xf32>
    %c0_3 = arith.constant 0 : index
    %c0_4 = arith.constant 0 : index
    %c0_5 = arith.constant 0 : index
    %2 = vector.load %arg3[%c0_3, %c0_4, %c0_5] : memref<1x2x128xi32, #tpu.memory_space<vmem>>, vector<1x2x128xi32>
    %3 = vector.shape_cast %2 : vector<1x2x128xi32> to vector<2x128xi32>
    %cst = arith.constant dense<0xFF800000> : vector<2x128xf32>
    %4 = vector.multi_reduction <maximumf>, %1, %cst [0] : vector<4x2x128xf32> to vector<2x128xf32>
    %5 = vector.shape_cast %4 : vector<2x128xf32> to vector<1x2x128xf32>
    %6 = vector.broadcast %5 : vector<1x2x128xf32> to vector<4x2x128xf32>
    %7 = arith.subf %1, %6 : vector<4x2x128xf32>
    %8 = math.exp %7 : vector<4x2x128xf32>
    %cst_6 = arith.constant dense<0.000000e+00> : vector<2x128xf32>
    %9 = vector.multi_reduction <add>, %8, %cst_6 [0] : vector<4x2x128xf32> to vector<2x128xf32>
    %10 = tpu.iota {dimensions = array<i32: 0>} : vector<4x2x128xi32>
    %11 = vector.shape_cast %3 : vector<2x128xi32> to vector<1x2x128xi32>
    %12 = vector.broadcast %11 : vector<1x2x128xi32> to vector<4x2x128xi32>
    %13 = arith.cmpi eq, %10, %12 : vector<4x2x128xi32>
    %cst_7 = arith.constant 0.000000e+00 : f32
    %14 = vector.broadcast %cst_7 : f32 to vector<4x2x128xf32>
    %15 = arith.select %13, %1, %14 : vector<4x2x128xi1>, vector<4x2x128xf32>
    %cst_8 = arith.constant dense<0.000000e+00> : vector<2x128xf32>
    %16 = vector.multi_reduction <add>, %15, %cst_8 [0] : vector<4x2x128xf32> to vector<2x128xf32>
    %cst_9 = arith.constant 0.000000e+00 : f32
    %17 = vector.broadcast %cst_9 : f32 to vector<4x2x128xf32>
    %18 = arith.select %13, %8, %17 : vector<4x2x128xi1>, vector<4x2x128xf32>
    %cst_10 = arith.constant dense<0.000000e+00> : vector<2x128xf32>
    %19 = vector.multi_reduction <add>, %18, %cst_10 [0] : vector<4x2x128xf32> to vector<2x128xf32>
    %20 = math.log %9 : vector<2x128xf32>
    %21 = arith.addf %4, %20 : vector<2x128xf32>
    %22 = arith.subf %21, %16 : vector<2x128xf32>
    %23 = tpu.reciprocal %9 : vector<2x128xf32> -> vector<2x128xf32>
    %24 = arith.subf %9, %19 : vector<2x128xf32>
    %25 = arith.mulf %24, %23 : vector<2x128xf32>
    %26 = arith.mulf %25, %25 : vector<2x128xf32>
    %cst_11 = arith.constant 2.500000e-01 : f32
    %27 = vector.broadcast %cst_11 : f32 to vector<2x128xf32>
    %28 = arith.mulf %27, %26 : vector<2x128xf32>
    %29 = arith.mulf %28, %22 : vector<2x128xf32>
    %cst_12 = arith.constant dense<0.000000e+00> : vector<128xf32>
    %30 = vector.multi_reduction <add>, %29, %cst_12 [0] : vector<2x128xf32> to vector<128xf32>
    %31 = vector.shape_cast %30 : vector<128xf32> to vector<1x128xf32>
    %c0_13 = arith.constant 0 : index
    %c0_14 = arith.constant 0 : index
    %c0_15 = arith.constant 0 : index
    %c0_16 = arith.constant 0 : index
    %32 = vector.load %arg4[%c0_13, %c0_14, %c0_15, %c0_16] : memref<1x1x1x128xf32, #tpu.memory_space<vmem>>, vector<1x1x1x128xf32>
    %33 = vector.shape_cast %32 : vector<1x1x1x128xf32> to vector<1x128xf32>
    %34 = vector.shape_cast %31 : vector<1x128xf32> to vector<1x1x1x128xf32>
    tpu.vector_store %arg4[%c0_13, %c0_14, %c0_15, %c0_16], %34 {strides = array<i32>} : memref<1x1x1x128xf32, #tpu.memory_space<vmem>>, vector<1x1x1x128xf32>,
    return
  }
  func.func @transform_0(%arg0: i32, %arg1: i32) -> (i32, i32, i32, i32) {
    %c0_i32 = arith.constant 0 : i32
    %c0_i32_0 = arith.constant 0 : i32
    %c0_i32_1 = arith.constant 0 : i32
    return %arg0, %c0_i32, %arg1, %c0_i32_0 : i32, i32, i32, i32
  }
  func.func @transform_1(%arg0: i32, %arg1: i32) -> (i32, i32, i32) {
    %c0_i32 = arith.constant 0 : i32
    %c0_i32_0 = arith.constant 0 : i32
    return %arg0, %arg1, %c0_i32 : i32, i32, i32
  }
  func.func @transform_2(%arg0: i32, %arg1: i32) -> (i32, i32, i32, i32) {
    %c0_i32 = arith.constant 0 : i32
    %c0_i32_0 = arith.constant 0 : i32
    %c0_i32_1 = arith.constant 0 : i32
    return %arg0, %arg1, %c0_i32, %c0_i32_0 : i32, i32, i32, i32
  }
}

</mosaic_0001>

<bundles_post_ra>
// kernel: tpu_custom_call.1
= control target key start
LH: loop header
LB: loop body
LE: loop exit
PB: predicated region body
PF: predicated region fallthrough
CT: control target
= control target key end

     0   :  { %7 = vsyncpa [#allocation3], 0  ;;  %s858_s0 = inlined_call_operand.hbm [shape: f32[2,4,2,128], index: 0, kind: input, shape index: {}]   ;;  %s859_s1 = inlined_call_operand.hbm [shape: s32[2,2,128], index: 1, kind: input, shape index: {}]   ;;  %s860_s2 = inlined_call_operand.hbm [shape: f32[2,1,1,128], index: 2, kind: output, shape index: {}]  }
   0x1   :  { %9 = vsyncpa [#allocation3 + $0x1], 0 }
   0x2   :  { %10 = vsyncpa [#allocation6], 0 }
   0x3   :  { %12 = vsyncpa [#allocation6 + $0x1], 0 }
   0x4   :  { %13 = vsyncpa [#allocation4], 0 }
   0x5   :  { %15 = vsyncpa [#allocation4 + $0x1], 0  ;;  %s687_s9 = smov 0   ;;  %s689_s10 = smov 0  }
   0x6   :  { %s691_s11 = smov 0   ;;  %s693_s12 = smov 0  }
   0x7   :  { %s695_s13 = smov 0   ;;  %s697_s14 = smov 0  }
   0x8 LB: > { %s426_s15 = sadd.s32 4294967295, %s668_s14   ;;  %s427_s16 = sadd.s32 4294967294, %s668_s14   ;;  %s668_s14 = sphi %s697_s14, %s21_s14   ;;  %s664_s13 = sphi %s695_s13, %s870_s13   ;;  %s660_s12 = sphi %s693_s12, %s869_s12   ;;  %s656_s11 = sphi %s691_s11, %s868_s11   ;;  %s652_s10 = sphi %s689_s10, %s867_s10   ;;  %s648_s9 = sphi %s687_s9, %s866_s9  }
   0x9   : > { %s33_s17 = sadd.s32 1, %s664_s13  ;;  %s42_s18 = sadd.s32 1, %s656_s11 }
   0xa   : > { %p35_p0 = scmp.ge.s32.totalorder %s33_s17, 2  ;;  %p49_p1 = scmp.ne.s32.totalorder %s656_s11, %s652_s10 }
   0xb   : > { %p50_p2 = scmp.eq.s32.totalorder %s668_s14, 0  ;;  %p55_p3 = scmp.ne.s32.totalorder %s652_s10, %s648_s9 }
   0xc   : > { %s872_s17 = smov (%p35_p0, %s33_s17), 0  ;;  %p56_p5 = scmp.eq.s32.totalorder %s426_s15, 0 }
   0xd   : > { %p728_p4 = por %p50_p2, %p49_p1  ;;  %s37_s20 = ssub.s32 %s664_s13, %s872_s17 }
   0xe   : > { %p109_p6 = scmp.eq.s32.totalorder %s426_s15, 1  ;;  %p40_p7 = scmp.eq.s32.totalorder %s37_s20, 0 }
   0xf   : > { %p734_p8 = por %p56_p5, %p55_p3  ;;  %p115_p10 = scmp.eq.s32.totalorder %s427_s16, 1 }
  0x10   : > { %p738_p9 = por %p109_p6, %p49_p1  ;;  %p429_p12 = scmp.ge.s32.totalorder %s668_s14, 2 }
  0x11   : > { %s743_s23 = scalar_select %p40_p7, %s656_s11, %s42_s18  }
  0x12   : > { %p745_p11 = por %p115_p10, %p55_p3  ;;  %p458_p13 = scmp.lt.s32.totalorder %s668_s14, 2 }
  0x13   : > { %s135_s25 = sand.u32 1, %s656_s11   ;;  %s440_s27 = sshll.u32 %s664_s13, 3 }
  0x14   : > { %s430_s26 = sshll.u32 %s135_s25, 3  ;;  %s145_s30 = scalar_lea.hbm %s858_s0, %s440_s27 }
  0x15   : > { %s139_s3 = scalar_lea.vmem [#allocation2], %s430_s26  ;;  %s146_s5 = sshll.u32 %s145_s30, 4  ;;  %s147_s5 = int_to_ptr.hbm [resolvable:$true] %s146_s5 }
  0x16   : > { %s148_s4 = sshll.u32 %s139_s3, 4  ;;  %p758_p0 = pnand %p458_p13, %p728_p4  ;;  %s149_s4 = int_to_ptr.vmem [resolvable:$true] %s148_s4 }
  0x17   : > { %p435_p1 = scmp.ge.s32.totalorder %s668_s14, 1  ;;  %s136_s7 = scalar_lea.sflag [#allocation3], %s135_s25 }
  0x18   : > { %s670_s8 = smov 32   ;;  %s671_s15 = smov 2  }
  0x19   : > { %450 = dma.hbm_to_vmem [thread:$0]  (!%p758_p0), %s147_s5, 128, %s149_s4, %s136_s7, %s670_s8, %s670_s8, %s671_s15  }
  0x1a   : > { %p176_p2 = scmp.lt.s32.totalorder %s668_s14, 3  ;;  %s433_s16 = sshll.u32 %s135_s25, 1 }
  0x1b   : > { %s434_s18 = sshll.u32 %s664_s13, 1  ;;  %s162_s27 = scalar_lea.vmem [#allocation5], %s433_s16 }
  0x1c   : > { %p177_p3 = pnand %p435_p1, %p176_p2  ;;  %s167_s19 = scalar_lea.hbm %s859_s1, %s434_s18 }
  0x1d   : > { %s171_s28 = sshll.u32 %s162_s27, 4  ;;  %s169_s29 = sshll.u32 %s167_s19, 4  ;;  %s172_s28 = int_to_ptr.vmem [resolvable:$true] %s171_s28  ;;  %s170_s29 = int_to_ptr.hbm [resolvable:$true] %s169_s29 }
  0x1e   : > { %s159_s30 = scalar_lea.sflag [#allocation6], %s135_s25  ;;  %180 = sbr.rel (%p177_p3) target bundleno = 106 (0x6a), region = 28 }
  0x1f   : > { %453 = dma.hbm_to_vmem [thread:$0]  (!%p758_p0), %s170_s29, 32, %s172_s28, %s159_s30  }
  0x20   : > { %s773_s3 = sand.u32 (!%p177_p3), 1, %s652_s10  }
  0x21   : > { %s436_s4 = sshll.u32 (!%p177_p3), %s773_s3, 3  ;;  %s183_s5 = scalar_lea.sflag (!%p177_p3), [#allocation3], %s773_s3 }
  0x22   : > { %s186_s7 = scalar_lea.vmem (!%p177_p3), [#allocation2], %s436_s4 }
  0x23   : > { %635 = dma.done.wait (%p734_p8), %s183_s5, 128  }
  0x24   : > { %637 = vsyncadd (%p734_p8), %s183_s5, 4294967168  ;;  %s437_s25 = sshll.u32 %s773_s3, 1  ;;  %s193_s6 = scalar_lea.sflag [#allocation6], %s773_s3 }
  0x25   : > { %s196_s8 = scalar_lea.vmem [#allocation5], %s437_s25 }
  0x26   : > { %639 = dma.done.wait (%p734_p8), %s193_s6, 32  }
  0x27   : > { %641 = vsyncadd (%p734_p8), %s193_s6, 4294967264  ;;  %vm227_vm0 = vcmask 1041408   ;;  %v222_v0 = vld [vmem:[%s186_s7] sm:$0x3]  ;;  %v223_v1 = vld [vmem:[%s186_s7 + $0x2] sm:$0x3]  ;;  %s321_s16 = scalar_lea.hbm %s860_s2, %s660_s12 }
  0x28   : > { %v224_v2 = vld [vmem:[%s186_s7 + $0x4] sm:$0x3]  ;;  %v225_v3 = vld [vmem:[%s186_s7 + $0x6] sm:$0x3]  ;;  %v228_v4 = vsel %vm227_vm0, %v222_v0, -inf  ;;  %v229_v5 = vsel %vm227_vm0, %v223_v1, -inf }
  0x29   : > { %v230_v6 = vsel %vm227_vm0, %v224_v2, -inf  ;;  %v231_v7 = vsel %vm227_vm0, %v225_v3, -inf  ;;  %v232_v8 = vmax.f32 %v228_v4, %v229_v5  ;;  %v226_v19 = vld [vmem:[%s196_s8] sm:$0x3]  ;;  %s221_s18 = scalar_lea.vmem [#allocation7], %s773_s3  ;;  %s325_s26 = sshll.u32 %s321_s16, 4  ;;  %s326_s26 = int_to_ptr.hbm [resolvable:$true] %s325_s26 }
  0x2a   : > { %v233_v9 = vmax.f32 %v230_v6, %v231_v7  ;;  %vm254_vm1 = vcmp.eq.s32.totalorder %v226_v19, 0  ;;  %vm255_vm2 = vcmp.eq.s32.totalorder %v226_v19, 1  ;;  %vm256_vm3 = vcmp.eq.s32.totalorder %v226_v19, 2  ;;  %s323_s20 = sshll.u32 %s221_s18, 4  ;;  %s312_s19 = scalar_lea.sflag [#allocation4], %s773_s3  ;;  %s324_s20 = int_to_ptr.vmem [resolvable:$true] %s323_s20 }
  0x2b   : > { %vm257_vm4 = vcmp.eq.s32.totalorder %v226_v19, 3  ;;  %v258_v37 = vsel %vm254_vm1, %v222_v0, 0.0  ;;  %v259_v38 = vsel %vm255_vm2, %v223_v1, 0.0  ;;  %v260_v44 = vsel %vm256_vm3, %v224_v2, 0.0  ;;  %s596_s27 = sshra.s32 %s326_s26, 4  ;;  %s602_s12 = scalar_lea.hbm %s860_s2, 2  ;;  %s597_s27 = int_to_ptr.hbm [resolvable:$true] %s596_s27 }
  0x2c   : > { %v791_v10 = vmax.f32 %v232_v8, %v233_v9  ;;  %v262_v41 = vsel %vm227_vm0, %v258_v37, 0.0  ;;  %v263_v42 = vsel %vm227_vm0, %v259_v38, 0.0  ;;  %v261_v50 = vsel %vm257_vm4, %v225_v3, 0.0  ;;  %s598_s28 = scalar_lea.hbm %s597_s27, 1  ;;  %p603_p7 = scmp.lt.s32.totalorder %s597_s27, %s860_s2 }
  0x2d   : > { %v264_v47 = vadd.f32 %v263_v42, %v262_v41  ;;  %v265_v51 = vsel %vm227_vm0, %v260_v44, 0.0  ;;  %v267_v59 = vsel %vm227_vm0, %v261_v50, 0.0  ;;  %p599_p4 = scmp.ne.s32.totalorder %s597_s27, %s598_s28  ;;  %p604_p8 = scmp.lt.s32.totalorder %s602_s12, %s598_s28 }
  0x2e   : > { %v235_v11 = vsub.f32 %v222_v0, %v791_v10  ;;  %v236_v12 = vsub.f32 %v223_v1, %v791_v10  ;;  %v237_v13 = vsub.f32 %v224_v2, %v791_v10  ;;  %v238_v14 = vsub.f32 %v225_v3, %v791_v10 }
  0x2f   : > { %v266_v56 = vadd.f32 %v265_v51, %v264_v47  ;;  %p600_p5 = pnand %p599_p4, %p738_p9  ;;  %p605_p10 = por %p604_p8, %p603_p7 }
  0x30   : > { %v239_v15 = vmul.f32 1.442695, %v235_v11  ;;  %v241_v16 = vmul.f32 1.442695, %v236_v12  ;;  %v243_v17 = vmul.f32 1.442695, %v237_v13 }
  0x31   : > { %v245_v18 = vmul.f32 1.442695, %v238_v14  ;;  %v268_v63 = vadd.f32 %v267_v59, %v266_v56  ;;  %p601_p6 = pneg %p600_p5 }
  0x32   : > { %510 = vpow2.f32 %v239_v15 }
  0x33   : > { %512 = vpow2.f32 %v241_v16  ;;  %p606_p13 = pnand %p605_p10, %p601_p6 }
  0x34   : > { %514 = vpow2.f32 %v243_v17 }
  0x35   : > { %516 = vpow2.f32 %v245_v18 }
  0x38   : > { %v511_v20 = vpop.eup %510 }
  0x39   : > { %v513_v21 = vpop.eup %512  ;;  %v247_v22 = vsel %vm227_vm0, %v511_v20, 0.0  ;;  %v269_v29 = vsel %vm254_vm1, %v511_v20, 0.0 }
  0x3a   : > { %v515_v23 = vpop.eup %514  ;;  %v248_v24 = vsel %vm227_vm0, %v513_v21, 0.0  ;;  %v270_v30 = vsel %vm255_vm2, %v513_v21, 0.0  ;;  %v273_v33 = vsel %vm227_vm0, %v269_v29, 0.0 }
  0x3b   : > { %v517_v25 = vpop.eup %516  ;;  %v249_v26 = vadd.f32 %v248_v24, %v247_v22  ;;  %v250_v27 = vsel %vm227_vm0, %v515_v23, 0.0  ;;  %v274_v34 = vsel %vm227_vm0, %v270_v30, 0.0  ;;  %v271_v35 = vsel %vm256_vm3, %v515_v23, 0.0 }
  0x3c   : > { %v252_v28 = vsel %vm227_vm0, %v517_v25, 0.0  ;;  %v275_v36 = vadd.f32 %v274_v34, %v273_v33  ;;  %v276_v39 = vsel %vm227_vm0, %v271_v35, 0.0  ;;  %v272_v40 = vsel %vm257_vm4, %v517_v25, 0.0 }
  0x3d   : > { %v251_v31 = vadd.f32 %v250_v27, %v249_v26  ;;  %v278_v45 = vsel %vm227_vm0, %v272_v40, 0.0 }
  0x3e   : > { %v277_v43 = vadd.f32 %v276_v39, %v275_v36 }
  0x3f   : > { %v253_v32 = vadd.f32 %v252_v28, %v251_v31 }
  0x40   : > { %v279_v52 = vadd.f32 %v278_v45, %v277_v43 }
  0x41   : > { %518 = vrcp.f32 %v253_v32  ;;  %v295_v53 = vand.u32 2147483648, %v253_v32  ;;  %vm289_vm5 = vweird.f32 %v253_v32  ;;  %v293_v55 = vand.u32 2147483647, %v253_v32 }
  0x42   : > { %520 = vlog2.f32 %v253_v32  ;;  %v298_v62 = vsub.f32 %v253_v32, %v279_v52 }
  0x43   : > { %v296_v60 = vor.u32 1.1754944e-38, %v295_v53  ;;  %vm294_vm8 = vcmp.eq.f32.partialorder %v293_v55, 8.507059e+37 }
  0x47   : > { %v519_v46 = vpop.eup %518 }
  0x48   : > { %v285_v48 = vmul.f32 %v519_v46, %v253_v32  ;;  %v521_v49 = vpop.eup %520  ;;  %vm290_vm6 = vweird.f32 %v519_v46 }
  0x49   : > { %v281_v57 = vmul.f32 0.6931472, %v521_v49  ;;  %vm291_vm7 = vmor %vm289_vm5, %vm290_vm6 }
  0x4a   : > { %v286_v54 = vsub.f32 1.0, %v285_v48 }
  0x4b   : > { %v282_v0 = vadd.f32 %v281_v57, %v791_v10 }
  0x4c   : > { %v287_v58 = vmul.f32 %v519_v46, %v286_v54 }
  0x4d   : > { %v283_v4 = vsub.f32 %v282_v0, %v268_v63 }
  0x4e   : > { %v288_v61 = vadd.f32 %v519_v46, %v287_v58 }
  0x50   : > { %v292_v1 = vsel %vm291_vm7, %v519_v46, %v288_v61 }
  0x51   : > { %v297_v2 = vsel %vm294_vm8, %v296_v60, %v292_v1 }
  0x52   : > { %v299_v3 = vmul.f32 %v298_v62, %v297_v2 }
  0x54   : > { %v300_v5 = vmul.f32 %v299_v3, %v299_v3 }
  0x56   : > { %v301_v6 = vmul.f32 0.25, %v300_v5 }
  0x58   : > { %v302_v7 = vmul.f32 %v301_v6, %v283_v4 }
  0x5a   : > { %v303_v8 = vsel %vm227_vm0, %v302_v7, 0.0 }
  0x5b   : > { %v304_v9 = vrot.slane %v303_v8, 4 }
  0x5d   : > { %v305_v11 = vadd.f32 %v304_v9, %v303_v8 }
  0x5f   : > { %v306_v12 = vrot.slane %v305_v11, 2 }
  0x61   : > { %v307_v13 = vadd.f32 %v306_v12, %v305_v11 }
  0x63   : > { %v308_v10 = vrot.slane %v307_v13, 1 }
  0x65   : > { %v309_v14 = vadd.f32 %v308_v10, %v307_v13 }
  0x67   : > { %310 = vst [vmem:[%s221_s18] sm:$0x1] %v309_v14 }
  0x68   : > { %609 = shalt.err (!%p606_p13)
}
  0x69   : > { %445 = dma.vmem_to_hbm [thread:$0]  (%p738_p9), %s324_s20, 16, %s326_s26, %s312_s19  }
  0x6a PF: > { %s337_s3 = sand.u32 1, %s648_s9   ;;  %p455_p0 = pnand %p429_p12, %p745_p11 }
  0x6b   : > { %s338_s7 = scalar_lea.sflag [#allocation4], %s337_s3 }
  0x6c   : > { %p456_p1 = pneg %p455_p0 }
  0x6e   : > { %643 = dma.done.wait (%p456_p1), %s338_s7, 16  }
  0x6f   : > { %645 = vsyncadd (%p456_p1), %s338_s7, 4294967280  ;;  %s21_s14 = sadd.s32 1, %s668_s14   ;;  %s866_s9 = smov %s652_s10 }
  0x70   : > { %p18_p2 = scmp.ge.s32.totalorder %s21_s14, 4   ;;  %s867_s10 = smov %s656_s11 }
  0x71   : > { %s868_s11 = smov %s743_s23  ;;  %s869_s12 = smov %s664_s13 }
  0x72   : > { %s870_s13 = smov %s872_s17  ;;  %20 = sbr.rel (!%p18_p2) target bundleno = 8 (0x8), region = 86 }
  0x77   :  { %343 = vsyncpa [#allocation3], 1 }
  0x78   :  { %345 = vsyncpa [#allocation3 + $0x1], 1 }
  0x79   :  { %346 = vsyncpa [#allocation6], 1 }
  0x7a   :  { %348 = vsyncpa [#allocation6 + $0x1], 1 }
  0x7b   :  { %349 = vsyncpa [#allocation4], 1 }
  0x7c   :  { %351 = vsyncpa [#allocation4 + $0x1], 1 }

</bundles_post_ra>
